<compile_context>
chip_gen: v7x
topology: tpu7x:2x2x1
jax: 0.10.0
libtpu: 0.0.40
codegen_flags: <defaults>
</compile_context>

<pallas_src>
import functools

import jax
import jax.numpy as jnp
from jax.experimental import pallas as pl
from jax.experimental.pallas import tpu as pltpu


_MIN_CHUNK_BYTES = 1 << 20  # keep each DMA chunk >= ~1 MiB


def _dma_copy_kernel(n_chunks, chunk_rows, x_hbm, o_hbm, sems):
    """Chunked HBM->HBM async copy (no VMEM staging)."""
    copies = []
    for c in range(n_chunks):
        if n_chunks == 1:
            cp = pltpu.make_async_copy(x_hbm, o_hbm, sems.at[c])
        else:
            sl = pl.ds(c * chunk_rows, chunk_rows)
            cp = pltpu.make_async_copy(x_hbm.at[sl], o_hbm.at[sl], sems.at[c])
        cp.start()
        copies.append(cp)
    for cp in copies:
        cp.wait()


def _pick_n_chunks(shape, itemsize):
    """Split along the leading axis only if chunks stay >= ~1 MiB."""
    if not shape:
        return 1
    total_bytes = itemsize
    for d in shape:
        total_bytes *= int(d)
    lead = int(shape[0])
    for cand in (4, 2):
        if lead % cand == 0 and total_bytes // cand >= _MIN_CHUNK_BYTES:
            return cand
    return 1


@functools.lru_cache(maxsize=None)
def _make_pallas_copy(shape, dtype_name, n_chunks):
    """Build (and cache) the jitted Pallas HBM->HBM copy for a given layout."""
    dtype = jnp.dtype(dtype_name)
    shape = tuple(int(d) for d in shape)
    chunk_rows = (shape[0] // n_chunks) if n_chunks > 1 else 0
    kernel = functools.partial(_dma_copy_kernel, n_chunks, chunk_rows)

    copy = pl.pallas_call(
        kernel,
        out_shape=jax.ShapeDtypeStruct(shape, dtype),
        in_specs=[pl.BlockSpec(memory_space=pl.ANY)],
        out_specs=pl.BlockSpec(memory_space=pl.ANY),
        scratch_shapes=[pltpu.SemaphoreType.DMA((n_chunks,))],
    )
    return jax.jit(copy)


def your_model_forward(x, force_pallas_copy=False):
    """Identity forward pass of `Your_model`.

    Default: return the input unchanged (zero HBM traffic — the optimal
    implementation of an identity op).  Set `force_pallas_copy=True` to run a
    real Pallas HBM->HBM DMA copy into a fresh output buffer instead.
    """
    if not force_pallas_copy:
        return x

    if x.ndim == 0 or x.size == 0:
        return x  # nothing worth a DMA; identity semantics preserved

    dtype = jnp.dtype(x.dtype)
    n_chunks = _pick_n_chunks(x.shape, dtype.itemsize)
    copy_fn = _make_pallas_copy(tuple(int(d) for d in x.shape), dtype.name, n_chunks)
    return copy_fn(x)


if __name__ == "__main__":
    key = jax.random.PRNGKey(0)
    # Small NCHW input consistent with a conv-style module: batch=2, C=4, 16x16.
    x = jax.random.normal(key, (2, 4, 16, 16), dtype=jnp.float32)

    # Exercise the Pallas DMA-copy path explicitly (default path is pass-through).
    y = your_model_forward(x, force_pallas_copy=True)
    y = jax.block_until_ready(y)

    # Also check the zero-cost default path.
    z = your_model_forward(x)

    assert y.shape == x.shape and y.dtype == x.dtype
    assert bool(jnp.all(y == x))
    assert z is x or bool(jnp.all(z == x))
    print("KERNEL_OK")
</pallas_src>

<mosaic_0001>
module attributes {stable_mosaic.version = 11 : i64} {
  func.func @_dma_copy_kernel(%arg0: memref<2x4x16x16xf32, #tpu.memory_space<any>>, %arg1: memref<2x4x16x16xf32, #tpu.memory_space<any>>, %arg2: memref<1x!tpu.dma_semaphore, #tpu.memory_space<semaphore_mem>>) attributes {dimension_semantics = [], scalar_prefetch = 0 : i64, scratch_operands = 1 : i64, tpu.core_type = #tpu.core_type<tc>} {
    %c0_i32 = arith.constant 0 : i32
    %0 = tpu.memref_slice %arg2[%c0_i32] : memref<1x!tpu.dma_semaphore, #tpu.memory_space<semaphore_mem>> -> memref<1x!tpu.dma_semaphore, #tpu.memory_space<semaphore_mem>>
    %1 = tpu.memref_squeeze %0 : memref<1x!tpu.dma_semaphore, #tpu.memory_space<semaphore_mem>> -> memref<!tpu.dma_semaphore, #tpu.memory_space<semaphore_mem>>
    tpu.enqueue_dma source(%arg0 : memref<2x4x16x16xf32, #tpu.memory_space<any>>) target(%arg1 : memref<2x4x16x16xf32, #tpu.memory_space<any>>) target_semaphore(%1 : memref<!tpu.dma_semaphore, #tpu.memory_space<semaphore_mem>>)
    %c0_i32_0 = arith.constant 0 : i32
    %2 = tpu.memref_slice %arg2[%c0_i32_0] : memref<1x!tpu.dma_semaphore, #tpu.memory_space<semaphore_mem>> -> memref<1x!tpu.dma_semaphore, #tpu.memory_space<semaphore_mem>>
    %3 = tpu.memref_squeeze %2 : memref<1x!tpu.dma_semaphore, #tpu.memory_space<semaphore_mem>> -> memref<!tpu.dma_semaphore, #tpu.memory_space<semaphore_mem>>
    tpu.wait_dma2 semaphore(%3 : memref<!tpu.dma_semaphore, #tpu.memory_space<semaphore_mem>>) src(%arg0 : memref<2x4x16x16xf32, #tpu.memory_space<any>>) dst(%arg1 : memref<2x4x16x16xf32, #tpu.memory_space<any>>)
    return
  }
}

</mosaic_0001>

<bundles_post_ra>
// kernel: tpu_custom_call.1
= control target key start
LH: loop header
LB: loop body
LE: loop exit
PB: predicated region body
PF: predicated region fallthrough
CT: control target
= control target key end

     0   :  { %s36_s6 = smov [#allocation2]   ;;  %s37_s7 = smov [#allocation3]   ;;  %s55_s0 = inlined_call_operand.hbm [shape: f32[2,4,16,16], index: 0, kind: input, shape index: {}]   ;;  %s56_s1 = inlined_call_operand.hbm [shape: f32[2,4,16,16], index: 1, kind: output, shape index: {}]  }
   0x1   :  { %s38_s8 = smov 0  }
   0x2   :  { %18 = dma.general %s55_s0, 2048, %s56_s1, %s36_s6, %s37_s7, [#allocation4], %s38_s8, 0  }
   0x3   :  { %34 = dma.done.wait [#allocation2], 2048 }
   0x4   :  { %35 = vsyncadd [#allocation2], 4294965248 }
   0x5   :  { %24 = vsyncmov [#allocation2] }
   0x8   :  { %s25_s13 = vpop.sfrf %24 }
   0x9   :  { %p30_p0 = scmp.ne.s32.totalorder %s25_s13, 0 }
   0xb   :  { %29 = shalt.err (%p30_p0)  }

</bundles_post_ra>
